<compile_context>
chip_gen: v6e
topology: v6e:2x2x1
jax: 0.10.0
libtpu: 0.0.40
codegen_flags: <defaults>
</compile_context>

<pallas_src>
import jax
import jax.numpy as jnp
from jax.experimental import pallas as pl
from jax.experimental.pallas import tpu as pltpu


def _loss_kernel(p_ref, out_ref):
    # p_ref  : (3,)   f32 in SMEM  (scalar memory, 16 B)
    # out_ref: (1, 1) f32 in SMEM
    d0 = p_ref[0] - 5.0
    d1 = p_ref[1]
    d2 = p_ref[2] - 1.0
    out_ref[0, 0] = d0 * d0 + d1 * d1 + d2 * d2


def _net_loss_pallas(p3: jax.Array) -> jax.Array:
    """Scalar-path Pallas loss on the first three parameters (f32, shape (3,))."""
    out = pl.pallas_call(
        _loss_kernel,
        out_shape=jax.ShapeDtypeStruct((1, 1), jnp.float32),
        in_specs=[pl.BlockSpec(memory_space=pltpu.SMEM)],
        out_specs=pl.BlockSpec(memory_space=pltpu.SMEM),
        cost_estimate=pl.CostEstimate(flops=6, transcendentals=0, bytes_accessed=16),
    )(p3)
    return out[0, 0]


def _net_loss_primal(pars: jax.Array) -> jax.Array:
    # Only the first 3 parameters enter the loss (matches torch.zeros_like +
    # explicit writes to out[0..2] in the reference).
    p3 = pars[:3].astype(jnp.float32)
    return _net_loss_pallas(p3)


@jax.custom_vjp
def net_loss(pars: jax.Array) -> jax.Array:
    """Pallas equivalent of Net.f(): (x0-5)^2 + x1^2 + (x2-1)^2."""
    return _net_loss_primal(pars)


def _net_loss_fwd(pars):
    return _net_loss_primal(pars), pars


def _net_loss_bwd(pars, g):
    target = jnp.array([5.0, 0.0, 1.0], jnp.float32).astype(pars.dtype)
    grad = jnp.zeros_like(pars).at[:3].set(2.0 * (pars[:3] - target))
    return (g.astype(pars.dtype) * grad,)


net_loss.defvjp(_net_loss_fwd, _net_loss_bwd)


def net_forward(pars: jax.Array, _unused, state: dict):
    """Mirrors Net.forward(_, state): updates state['est'] and returns f()."""
    state = dict(state)
    state["est"] = pars
    return net_loss(pars), state


if __name__ == "__main__":
    key = jax.random.PRNGKey(0)
    # Parameter vector of length 3, as implied by f()'s indexing.
    pars = jax.random.normal(key, (3,), dtype=jnp.float32)

    loss, state = net_forward(pars, None, {})
    loss = jax.block_until_ready(loss)

    # Pure-JAX reference check (forward).
    ref = (pars[0] - 5.0) ** 2 + pars[1] ** 2 + (pars[2] - 1.0) ** 2
    assert jnp.allclose(loss, ref, rtol=1e-6, atol=1e-6), (loss, ref)
    assert jnp.array_equal(state["est"], pars)

    # Gradient check (custom_vjp), since Net is used in a gradient optimizer.
    g = jax.block_until_ready(jax.grad(net_loss)(pars))
    g_ref = 2.0 * (pars - jnp.array([5.0, 0.0, 1.0], jnp.float32))
    assert jnp.allclose(g, g_ref, rtol=1e-6, atol=1e-6), (g, g_ref)

    print("KERNEL_OK")
</pallas_src>

<mosaic_0001>
module attributes {stable_mosaic.version = 11 : i64} {
  func.func @_loss_kernel(%arg0: memref<3xf32, #tpu.memory_space<smem>>, %arg1: memref<1x1xf32, #tpu.memory_space<smem>>) attributes {dimension_semantics = [], scalar_prefetch = 0 : i64, scratch_operands = 0 : i64, tpu.core_type = #tpu.core_type<tc>} {
    %c0 = arith.constant 0 : index
    %0 = memref.load %arg0[%c0] : memref<3xf32, #tpu.memory_space<smem>>
    %cst = arith.constant 5.000000e+00 : f32
    %1 = arith.subf %0, %cst : f32
    %c1 = arith.constant 1 : index
    %2 = memref.load %arg0[%c1] : memref<3xf32, #tpu.memory_space<smem>>
    %c2 = arith.constant 2 : index
    %3 = memref.load %arg0[%c2] : memref<3xf32, #tpu.memory_space<smem>>
    %cst_0 = arith.constant 1.000000e+00 : f32
    %4 = arith.subf %3, %cst_0 : f32
    %5 = arith.mulf %1, %1 : f32
    %6 = arith.mulf %2, %2 : f32
    %7 = arith.addf %5, %6 : f32
    %8 = arith.mulf %4, %4 : f32
    %9 = arith.addf %7, %8 : f32
    %c0_1 = arith.constant 0 : index
    %c0_2 = arith.constant 0 : index
    %10 = memref.load %arg1[%c0_1, %c0_2] : memref<1x1xf32, #tpu.memory_space<smem>>
    memref.store %9, %arg1[%c0_1, %c0_2] : memref<1x1xf32, #tpu.memory_space<smem>>
    return
  }
}

</mosaic_0001>

<bundles_post_ra>
// kernel: tpu_custom_call.1
= control target key start
LH: loop header
LB: loop body
LE: loop exit
PB: predicated region body
PF: predicated region fallthrough
CT: control target
= control target key end

     0   :  { %6 = vsyncpa [#allocation3], 0  ;;  %s90_s0 = inlined_call_operand.hbm [shape: f32[3], index: 0, kind: input, shape index: {}]   ;;  %s91_s1 = inlined_call_operand.hbm [shape: f32[1,1], index: 1, kind: output, shape index: {}]  }
   0x1   :  { %7 = vsyncpa [#allocation4], 0  ;;  %s72_s6 = smov [#allocation2]  }
   0x2   :  { %15 = dma.hbm_to_smem %s90_s0, 16, %s72_s6, [#allocation3]  }
   0x3   :  { %68 = dma.done.wait [#allocation3], 16  }
   0x4   :  { %69 = vsyncadd [#allocation3], 4294967280 }
   0x5   :  { %19 = sfence }
   0x6   :  { %s20_s9 = sld [smem:[#allocation2]]  ;;  %s73_s19 = smov [#allocation5]  }
   0x7   :  { %s47_s10 = sld [smem:[#allocation2 + $0x1]] }
   0x8   :  { %s48_s11 = sld [smem:[#allocation2 + $0x2]] }
   0xc   :  { %s46_s12 = sadd.f32 -5.0, %s20_s9 }
   0xd   :  { %s26_s13 = smul.f32 %s47_s10, %s47_s10 }
   0xe   :  { %s49_s14 = sadd.f32 -1.0, %s48_s11  ;;  %s25_s15 = smul.f32 %s46_s12, %s46_s12 }
  0x10   :  { %s27_s16 = sadd.f32 %s26_s13, %s25_s15  ;;  %s28_s17 = smul.f32 %s49_s14, %s49_s14 }
  0x12   :  { %s29_s18 = sadd.f32 %s28_s17, %s27_s16 }
  0x14   :  { %31 = sst [smem:[#allocation5]] %s29_s18 }
  0x15   :  { %39 = dma.smem_to_hbm %s73_s19, 16, %s91_s1, [#allocation4]  }
  0x16   :  { %70 = dma.done.wait [#allocation4], 16  }
  0x17   :  { %71 = vsyncadd [#allocation4], 4294967280 }
  0x18   :  { %43 = sfence }
  0x19   :  { %44 = vsyncpa [#allocation3], 1 }
  0x1a   :  { %45 = vsyncpa [#allocation4], 1 }

</bundles_post_ra>
